<compile_context>
chip_gen: v7x
topology: tpu7x:2x2x1
jax: 0.10.0
libtpu: 0.0.40
codegen_flags: <defaults>
</compile_context>

<pallas_src>
import functools

import jax
import jax.numpy as jnp
from jax import lax
from jax.experimental import pallas as pl
from jax.experimental.pallas import tpu as pltpu

BN_EPS = 1e-5


def _round_up(v, m):
    return (v + m - 1) // m * m


def _cdiv(a, b):
    return -(-a // b)


def _vmem_budget_bytes():
    """Per-generation VMEM budget (v7x: 64 MiB physical, v5e/v6e: 128 MiB)."""
    try:
        cap = int(getattr(pltpu.get_tpu_info(), "vmem_capacity_bytes"))
    except Exception:
        cap = 64 * 1024 * 1024
    return max(16 * 1024 * 1024, min(cap * 3 // 4, 96 * 1024 * 1024))


def _im2col_tile(x, k, l_cols):
    """x: (C_in, >= l_cols + k - 1) -> (k*C_in, l_cols).

    Row order is j*C_in + i (tap-major), matching weight.transpose(0, 2, 1).reshape."""
    if k == 1:
        return x if x.shape[1] == l_cols else x[:, :l_cols]
    return jnp.concatenate([x[:, j:j + l_cols] for j in range(k)], axis=0)


def _stats_kernel(*args, k, l_cols, l_valid, mask_tail, halo):
    """Accumulate s = sum_l x_im2col  (ck, 1)  and  G = X_im2col @ X_im2col^T  (ck, ck)."""
    if halo:
        x_ref, xh_ref, s_ref, g_ref = args
    else:
        x_ref, s_ref, g_ref = args

    @pl.when((pl.program_id(0) == 0) & (pl.program_id(1) == 0))
    def _():
        s_ref[...] = jnp.zeros_like(s_ref)
        g_ref[...] = jnp.zeros_like(g_ref)

    x = x_ref[0].astype(jnp.bfloat16)                       # bf16-round to match pass 2
    if halo:
        x = jnp.concatenate([x, xh_ref[0].astype(jnp.bfloat16)], axis=1)
    xt = _im2col_tile(x, k, l_cols).astype(jnp.float32)     # f32 math on rounded values
    if mask_tail:                                           # zero padded output columns
        lane = pl.program_id(1) * l_cols + lax.broadcasted_iota(jnp.int32, (1, l_cols), 1)
        xt = jnp.where(lane < l_valid, xt, jnp.zeros_like(xt))
    ones = jnp.ones((l_cols, 1), jnp.float32)
    s_ref[...] += jnp.dot(xt, ones, preferred_element_type=jnp.float32)
    g_ref[...] += jnp.dot(xt, xt.T, preferred_element_type=jnp.float32)


def _apply_kernel(*args, k, l_cols, relu, halo):
    """out = [relu](W @ X_im2col * scale + shift), written in (N, C_out, L) layout."""
    if halo:
        x_ref, xh_ref, w_ref, scale_ref, shift_ref, o_ref = args
    else:
        x_ref, w_ref, scale_ref, shift_ref, o_ref = args
    x = x_ref[0].astype(jnp.bfloat16)
    if halo:
        x = jnp.concatenate([x, xh_ref[0].astype(jnp.bfloat16)], axis=1)
    xt = _im2col_tile(x, k, l_cols)                          # (ck, l_cols) bf16
    y = jnp.dot(w_ref[...], xt, preferred_element_type=jnp.float32)
    y = y * scale_ref[...] + shift_ref[...]
    if relu:
        y = jnp.maximum(y, 0.0)
    o_ref[0] = y.astype(o_ref.dtype)


def conv_bn_forward(x, weight, bias, gamma, beta, *, ksize=1, pad=0, no_bn=False,
                    lane_tile=None, co_tile=None, out_dtype=jnp.float32):
    """x: (N, C_in, L) f32; weight: (C_out, C_in, K); bias/gamma/beta: (C_out,)."""
    n, c_in, length = x.shape
    c_out = weight.shape[0]
    k = int(ksize)
    l_out = length + 2 * pad - k + 1
    assert l_out > 0, "empty conv output"
    ck = c_in * k

    budget = _vmem_budget_bytes()
    out_bytes = jnp.dtype(out_dtype).itemsize
    halo_w = _round_up(k - 1, 128) if k > 1 else 0

    # ---------------------------- tile selection -------------------------------------
    def fits(co_t_, l_t_):
        need = (2 * c_in * l_t_ * 4                    # double-buffered X tile (f32 worst)
                + 2 * c_in * halo_w * 4                # halo tile
                + 2 * co_t_ * ck * 2                   # weight tile (bf16)
                + 2 * co_t_ * l_t_ * out_bytes         # double-buffered output tile
                + 3 * ck * l_t_ * 4                    # in-kernel im2col tile + temporaries
                + 2 * ck * ck * 4 + 8 * co_t_ * 4)     # Gram / scale / shift
        return need <= budget * 7 // 10

    # Default: no C_out tiling (W is tiny; avoids re-reading X per C_out tile).
    co_t = c_out if co_tile is None else min(max(8, _round_up(co_tile, 8)),
                                             _round_up(c_out, 8))
    lane_cap = _round_up(l_out, 128)
    if lane_tile is not None:
        l_t = min(_round_up(lane_tile, 128), lane_cap)
    else:
        l_t = 128
        for cand in (4096, 2048, 1024, 512, 256):
            if cand <= lane_cap and fits(co_t, cand):
                l_t = cand
                break
    while not fits(co_t, min(l_t, lane_cap)) and co_t > 8:
        co_t = max(8, _round_up(co_t // 2, 8))
    if co_t >= c_out:
        co_t, c_out_p = c_out, c_out
    else:
        c_out_p = _round_up(c_out, co_t)

    if l_t >= l_out:               # single lane block: no lane padding, no halo, no slice
        tiled, num_lb, l_cols = False, 1, l_out
    else:
        num_lb = _cdiv(l_out, l_t)
        l_cols = _round_up(_cdiv(l_out, num_lb), 128)    # rebalance to minimize padding
        if halo_w:
            l_cols = _round_up(l_cols, halo_w)
        tiled = True
    halo = tiled and k > 1
    mask_tail = halo and (num_lb * l_cols > l_out)

    # ---------------------------- input construction ---------------------------------
    if tiled:
        l_pad_total = (num_lb + (1 if halo else 0)) * l_cols   # extra block feeds the halo
        xa_l = l_cols
    else:
        l_pad_total = length + 2 * pad                          # == l_out + k - 1
        xa_l = l_pad_total
    pad_r = l_pad_total - length - pad
    if pad == 0 and pad_r == 0:
        x_in = x                       # zero-copy: f32 fed directly, cast to bf16 in-kernel
    else:
        x_in = jnp.pad(x, ((0, 0), (0, 0), (pad, pad_r))).astype(jnp.bfloat16)

    # tap-major flattened weight: contraction index j*C_in + i (matches _im2col_tile).
    w2d = weight.transpose(0, 2, 1).reshape(c_out, ck).astype(jnp.bfloat16)
    w2d_p = jnp.pad(w2d, ((0, c_out_p - c_out), (0, 0))) if c_out_p > c_out else w2d

    hstride = (l_cols // halo_w) if halo else 0

    # ---------------------------- pass 1: X-moment stats -----------------------------
    if no_bn:
        scale = jnp.ones((c_out, 1), jnp.float32)
        shift = bias.reshape(c_out, 1).astype(jnp.float32)
        relu = False
    else:
        stats_specs = [pl.BlockSpec((1, c_in, xa_l), lambda ni, li: (ni, 0, li))]
        stats_args = [x_in]
        if halo:
            stats_specs.append(pl.BlockSpec(
                (1, c_in, halo_w), lambda ni, li: (ni, 0, (li + 1) * hstride)))
            stats_args.append(x_in)
        s, g = pl.pallas_call(
            functools.partial(_stats_kernel, k=k, l_cols=l_cols, l_valid=l_out,
                              mask_tail=mask_tail, halo=halo),
            grid=(n, num_lb),
            in_specs=stats_specs,
            out_specs=(pl.BlockSpec((ck, 1), lambda ni, li: (0, 0)),
                       pl.BlockSpec((ck, ck), lambda ni, li: (0, 0))),
            out_shape=(jax.ShapeDtypeStruct((ck, 1), jnp.float32),
                       jax.ShapeDtypeStruct((ck, ck), jnp.float32)),
            compiler_params=pltpu.CompilerParams(
                dimension_semantics=("arbitrary", "arbitrary"),
                vmem_limit_bytes=budget),
        )(*stats_args)
        # TODO(synk): on v7x, split this reduction into two partial accumulators along a
        # leading "parallel" axis so both TensorCores contribute (it is HBM-bound).

        count = float(n * l_out)
        wf = w2d.astype(jnp.float32)                       # bf16-rounded weights, f32 math
        mean = (wf @ s) / count                            # (c_out, 1)
        scat = g - (s @ s.T) / count                       # centered scatter (PSD up to rounding)
        var = jnp.maximum(jnp.sum((wf @ scat) * wf, axis=1), 0.0) / count
        # TODO(synk): for very large N*L the raw-moment form can lose f32 precision;
        # a per-channel-shifted Gram accumulation (Welford-style combine) would fix it.
        scale = gamma.reshape(c_out, 1) * lax.rsqrt(var.reshape(c_out, 1) + BN_EPS)
        shift = beta.reshape(c_out, 1) - mean * scale      # conv bias cancels exactly
        relu = True

    if c_out_p > c_out:
        scale = jnp.pad(scale, ((0, c_out_p - c_out), (0, 0)))
        shift = jnp.pad(shift, ((0, c_out_p - c_out), (0, 0)))
    scale = scale.astype(jnp.float32)
    shift = shift.astype(jnp.float32)

    # ---------------------------- pass 2: conv + folded BN FMA (+ ReLU) --------------
    apply_specs = [pl.BlockSpec((1, c_in, xa_l), lambda ni, li, co: (ni, 0, li))]
    apply_args = [x_in]
    if halo:
        apply_specs.append(pl.BlockSpec(
            (1, c_in, halo_w), lambda ni, li, co: (ni, 0, (li + 1) * hstride)))
        apply_args.append(x_in)
    apply_specs += [pl.BlockSpec((co_t, ck), lambda ni, li, co: (co, 0)),
                    pl.BlockSpec((co_t, 1), lambda ni, li, co: (co, 0)),
                    pl.BlockSpec((co_t, 1), lambda ni, li, co: (co, 0))]
    apply_args += [w2d_p, scale, shift]

    out_l_total = num_lb * l_cols
    y = pl.pallas_call(
        functools.partial(_apply_kernel, k=k, l_cols=l_cols, relu=relu, halo=halo),
        grid=(n, num_lb, c_out_p // co_t),       # C_out innermost: X block revisited, so
        in_specs=apply_specs,                    # Pallas skips its re-fetch per co step.
        out_specs=pl.BlockSpec((1, co_t, l_cols), lambda ni, li, co: (ni, co, li)),
        out_shape=jax.ShapeDtypeStruct((n, c_out_p, out_l_total), out_dtype),
        compiler_params=pltpu.CompilerParams(
            dimension_semantics=("parallel", "parallel", "arbitrary"),
            vmem_limit_bytes=budget),
    )(*apply_args)

    if c_out_p > c_out or out_l_total > l_out:   # slice only when padding was required
        y = y[:, :c_out, :l_out]
    return y


def _reference(x, weight, bias, gamma, beta, *, pad=0, no_bn=False):
    """Pure-JAX reference mirroring the PyTorch module (training-mode batch-stat BN).
    Inputs are rounded to bf16 to match the kernel's MXU input precision."""
    xb = x.astype(jnp.bfloat16).astype(jnp.float32)
    wb = weight.astype(jnp.bfloat16).astype(jnp.float32)
    y = lax.conv_general_dilated(xb, wb, window_strides=(1,), padding=[(pad, pad)],
                                 dimension_numbers=("NCH", "OIH", "NCH"))
    y = y + bias[None, :, None]
    if no_bn:
        return y
    mean = jnp.mean(y, axis=(0, 2), keepdims=True)
    var = jnp.mean(jnp.square(y - mean), axis=(0, 2), keepdims=True)
    y_hat = (y - mean) * lax.rsqrt(var + BN_EPS)
    return jnp.maximum(y_hat * gamma[None, :, None] + beta[None, :, None], 0.0)


if __name__ == "__main__":
    key = jax.random.PRNGKey(0)
    kx, kw, kb, kx2, kw2, kg, kbe = jax.random.split(key, 7)

    # --- default module config: ksize=1, pad=0, Conv -> BN (batch stats) -> ReLU -----
    N, C_IN, C_OUT, L = 2, 4, 8, 16
    x = jax.random.normal(kx, (N, C_IN, L), dtype=jnp.float32)
    bound = 1.0 / (C_IN ** 0.5)
    w1 = jax.random.uniform(kw, (C_OUT, C_IN, 1), jnp.float32, -bound, bound)
    b1 = jax.random.uniform(kb, (C_OUT,), jnp.float32, -bound, bound)
    gamma = jnp.ones((C_OUT,), jnp.float32)     # BatchNorm1d default weight
    beta = jnp.zeros((C_OUT,), jnp.float32)     # BatchNorm1d default bias

    out = jax.block_until_ready(conv_bn_forward(x, w1, b1, gamma, beta, ksize=1, pad=0))
    ref = _reference(x, w1, b1, gamma, beta, pad=0)
    assert out.shape == ref.shape == (N, C_OUT, L)
    assert jnp.allclose(out, ref, atol=2e-3, rtol=2e-3), "BN path (k=1) mismatch"

    # --- no_bn path: conv + bias only, no ReLU ----------------------------------------
    out_nb = jax.block_until_ready(
        conv_bn_forward(x, w1, b1, gamma, beta, ksize=1, pad=0, no_bn=True))
    ref_nb = _reference(x, w1, b1, gamma, beta, pad=0, no_bn=True)
    assert jnp.allclose(out_nb, ref_nb, atol=2e-3, rtol=2e-3), "no_bn path mismatch"

    # --- ksize=3, pad=1 (single lane block: K taps folded in-kernel, no HBM im2col) --
    b3 = 1.0 / ((C_IN * 3) ** 0.5)
    w3 = jax.random.uniform(kw, (C_OUT, C_IN, 3), jnp.float32, -b3, b3)
    out3 = jax.block_until_ready(conv_bn_forward(x, w3, b1, gamma, beta, ksize=3, pad=1))
    ref3 = _reference(x, w3, b1, gamma, beta, pad=1)
    assert out3.shape == (N, C_OUT, L)
    assert jnp.allclose(out3, ref3, atol=2e-3, rtol=2e-3), "ksize=3 path mismatch"

    # --- tiled lane axis + halo block + C_out tiling (forced small tiles) -------------
    C_OUT2, L2 = 16, 380
    x2 = jax.random.normal(kx2, (N, C_IN, L2), dtype=jnp.float32)
    w4 = jax.random.uniform(kw2, (C_OUT2, C_IN, 3), jnp.float32, -b3, b3)
    b4 = jax.random.uniform(kb, (C_OUT2,), jnp.float32, -b3, b3)
    g4 = jax.random.uniform(kg, (C_OUT2,), jnp.float32, 0.5, 1.5)
    be4 = jax.random.uniform(kbe, (C_OUT2,), jnp.float32, -0.5, 0.5)
    out4 = jax.block_until_ready(conv_bn_forward(
        x2, w4, b4, g4, be4, ksize=3, pad=1, lane_tile=128, co_tile=8))
    ref4 = _reference(x2, w4, b4, g4, be4, pad=1)
    assert out4.shape == (N, C_OUT2, L2)
    assert jnp.allclose(out4, ref4, atol=2e-3, rtol=2e-3), "tiled/halo path mismatch"

    # --- tiled lane axis, ksize=1 (no halo) --------------------------------------------
    L3 = 300
    x3 = jax.random.normal(kx2, (N, C_IN, L3), dtype=jnp.float32)
    out5 = jax.block_until_ready(conv_bn_forward(
        x3, w1, b1, gamma, beta, ksize=1, pad=0, lane_tile=128))
    ref5 = _reference(x3, w1, b1, gamma, beta, pad=0)
    assert jnp.allclose(out5, ref5, atol=2e-3, rtol=2e-3), "tiled k=1 path mismatch"

    print("KERNEL_OK")
</pallas_src>

<mosaic_0001>
module attributes {stable_mosaic.version = 11 : i64} {
  func.func @_stats_kernel(%arg0: i32, %arg1: i32, %arg2: memref<1x4x16xf32, #tpu.memory_space<vmem>>, %arg3: memref<4x1xf32, #tpu.memory_space<vmem>>, %arg4: memref<4x4xf32, #tpu.memory_space<vmem>>) attributes {dimension_semantics = [#tpu.dimension_semantics<arbitrary>, #tpu.dimension_semantics<arbitrary>], iteration_bounds = array<i64: 2, 1>, scalar_prefetch = 0 : i64, scratch_operands = 0 : i64, tpu.core_type = #tpu.core_type<tc>, window_params = [{transform_indices = @transform_0, window_bounds = array<i64: 1, 4, 16>}, {pipeline_mode = #tpu.pipeline_mode<synchronous>, transform_indices = @transform_1, window_bounds = array<i64: 4, 1>}, {pipeline_mode = #tpu.pipeline_mode<synchronous>, transform_indices = @transform_2, window_bounds = array<i64: 4, 4>}]} {
    %c0_i32 = arith.constant 0 : i32
    %0 = arith.cmpi eq, %arg0, %c0_i32 : i32
    %c0_i32_0 = arith.constant 0 : i32
    %1 = arith.cmpi eq, %arg1, %c0_i32_0 : i32
    %2 = arith.andi %0, %1 : i1
    %3 = arith.extui %2 : i1 to i32
    %c0_i32_1 = arith.constant 0 : i32
    %4 = arith.cmpi ne, %3, %c0_i32_1 : i32
    scf.if %4 {
      %cst_14 = arith.constant 0.000000e+00 : f32
      %19 = vector.broadcast %cst_14 : f32 to vector<4x1xf32>
      %c0_15 = arith.constant 0 : index
      %c0_16 = arith.constant 0 : index
      %20 = vector.load %arg3[%c0_15, %c0_16] : memref<4x1xf32, #tpu.memory_space<vmem>>, vector<4x1xf32>
      tpu.vector_store %arg3[%c0_15, %c0_16], %19 {strides = array<i32>} : memref<4x1xf32, #tpu.memory_space<vmem>>, vector<4x1xf32>,
      %cst_17 = arith.constant 0.000000e+00 : f32
      %21 = vector.broadcast %cst_17 : f32 to vector<4x4xf32>
      %c0_18 = arith.constant 0 : index
      %c0_19 = arith.constant 0 : index
      %22 = vector.load %arg4[%c0_18, %c0_19] : memref<4x4xf32, #tpu.memory_space<vmem>>, vector<4x4xf32>
      tpu.vector_store %arg4[%c0_18, %c0_19], %21 {strides = array<i32>} : memref<4x4xf32, #tpu.memory_space<vmem>>, vector<4x4xf32>,
    } else {
    }
    %c0 = arith.constant 0 : index
    %c0_2 = arith.constant 0 : index
    %c0_3 = arith.constant 0 : index
    %5 = vector.load %arg2[%c0, %c0_2, %c0_3] : memref<1x4x16xf32, #tpu.memory_space<vmem>>, vector<1x4x16xf32>
    %6 = vector.shape_cast %5 : vector<1x4x16xf32> to vector<4x16xf32>
    %7 = arith.truncf %6 : vector<4x16xf32> to vector<4x16xbf16>
    %8 = arith.extf %7 : vector<4x16xbf16> to vector<4x16xf32>
    %cst = arith.constant 1.000000e+00 : f32
    %9 = vector.broadcast %cst : f32 to vector<16x1xf32>
    %c0_4 = arith.constant 0 : index
    %c0_5 = arith.constant 0 : index
    %10 = vector.load %arg3[%c0_4, %c0_5] : memref<4x1xf32, #tpu.memory_space<vmem>>, vector<4x1xf32>
    %cst_6 = arith.constant dense<0.000000e+00> : vector<4x1xf32>
    %11 = tpu.matmul %8, %9, %cst_6 {dimension_numbers = #tpu.dot_dimension_numbers<[1], [0], [0], [1], [0, 0, 1, 1], [], []>} : vector<4x16xf32>, vector<16x1xf32>, vector<4x1xf32> -> vector<4x1xf32>
    %12 = arith.addf %10, %11 : vector<4x1xf32>
    %c0_7 = arith.constant 0 : index
    %c0_8 = arith.constant 0 : index
    %13 = vector.load %arg3[%c0_7, %c0_8] : memref<4x1xf32, #tpu.memory_space<vmem>>, vector<4x1xf32>
    tpu.vector_store %arg3[%c0_7, %c0_8], %12 {strides = array<i32>} : memref<4x1xf32, #tpu.memory_space<vmem>>, vector<4x1xf32>,
    %c0_9 = arith.constant 0 : index
    %c0_10 = arith.constant 0 : index
    %14 = vector.load %arg4[%c0_9, %c0_10] : memref<4x4xf32, #tpu.memory_space<vmem>>, vector<4x4xf32>
    %15 = tpu.transpose %8, [1, 0] : vector<4x16xf32> -> vector<16x4xf32>
    %cst_11 = arith.constant dense<0.000000e+00> : vector<4x4xf32>
    %16 = tpu.matmul %8, %15, %cst_11 {dimension_numbers = #tpu.dot_dimension_numbers<[1], [0], [0], [1], [0, 0, 1, 1], [], []>} : vector<4x16xf32>, vector<16x4xf32>, vector<4x4xf32> -> vector<4x4xf32>
    %17 = arith.addf %14, %16 : vector<4x4xf32>
    %c0_12 = arith.constant 0 : index
    %c0_13 = arith.constant 0 : index
    %18 = vector.load %arg4[%c0_12, %c0_13] : memref<4x4xf32, #tpu.memory_space<vmem>>, vector<4x4xf32>
    tpu.vector_store %arg4[%c0_12, %c0_13], %17 {strides = array<i32>} : memref<4x4xf32, #tpu.memory_space<vmem>>, vector<4x4xf32>,
    return
  }
  func.func @transform_0(%arg0: i32, %arg1: i32) -> (i32, i32, i32) {
    %c0_i32 = arith.constant 0 : i32
    %c0_i32_0 = arith.constant 0 : i32
    return %arg0, %c0_i32, %arg1 : i32, i32, i32
  }
  func.func @transform_1(%arg0: i32, %arg1: i32) -> (i32, i32) {
    %c0_i32 = arith.constant 0 : i32
    %c0_i32_0 = arith.constant 0 : i32
    %c0_i32_1 = arith.constant 0 : i32
    return %c0_i32, %c0_i32_0 : i32, i32
  }
  func.func @transform_2(%arg0: i32, %arg1: i32) -> (i32, i32) {
    %c0_i32 = arith.constant 0 : i32
    %c0_i32_0 = arith.constant 0 : i32
    %c0_i32_1 = arith.constant 0 : i32
    return %c0_i32, %c0_i32_0 : i32, i32
  }
}

</mosaic_0001>

<bundles_post_ra>
// kernel: tpu_custom_call.1
= control target key start
LH: loop header
LB: loop body
LE: loop exit
PB: predicated region body
PF: predicated region fallthrough
CT: control target
= control target key end

     0   :  { %8 = vsyncpa [#allocation3], 0  ;;  %s794_s0 = inlined_call_operand.hbm [shape: f32[2,4,16], index: 0, kind: input, shape index: {}]   ;;  %s795_s1 = inlined_call_operand.vmem [shape: f32[4,1], index: 1, kind: output, shape index: {0}]   ;;  %s796_s2 = inlined_call_operand.hbm [shape: f32[4,4], index: 2, kind: output, shape index: {1}]  }
   0x1   :  { %10 = vsyncpa [#allocation3 + $0x1], 0 }
   0x2   :  { %11 = vsyncpa [#allocation4], 0  ;;  %s634_s9 = smov 0   ;;  %s636_s10 = smov 0  }
   0x3   :  { %s638_s11 = smov 0   ;;  %s640_s12 = smov 0  }
   0x4   :  { %s642_s13 = smov 0   ;;  %s644_s14 = smov 0  }
   0x5 LB: > { %s398_s15 = sadd.s32 4294967295, %s610_s14   ;;  %s29_s16 = sadd.s32 1, %s606_s13  ;;  %s610_s14 = sphi %s644_s14, %s17_s14   ;;  %s606_s13 = sphi %s642_s13, %s807_s13   ;;  %s602_s12 = sphi %s640_s12, %s806_s12   ;;  %s598_s11 = sphi %s638_s11, %s805_s11   ;;  %s594_s10 = sphi %s636_s10, %s804_s10   ;;  %s590_s9 = sphi %s634_s9, %s803_s9  }
   0x6   : > { %p31_p0 = scmp.ge.s32.totalorder %s29_s16, 2  ;;  %s38_s17 = sadd.s32 1, %s598_s11 }
   0x7   : > { %p45_p1 = scmp.ne.s32.totalorder %s598_s11, %s594_s10  ;;  %p46_p2 = scmp.eq.s32.totalorder %s610_s14, 0 }
   0x8   : > { %s809_s16 = smov (%p31_p0, %s29_s16), 0  ;;  %p51_p4 = scmp.ne.s32.totalorder %s594_s10, %s590_s9 }
   0x9   : > { %p670_p3 = por %p46_p2, %p45_p1  ;;  %s33_s19 = ssub.s32 %s606_s13, %s809_s16 }
   0xa   : > { %p52_p5 = scmp.eq.s32.totalorder %s398_s15, 0  ;;  %p36_p6 = scmp.eq.s32.totalorder %s33_s19, 0 }
   0xb   : > { %p443_p8 = scmp.lt.s32.totalorder %s610_s14, 2  ;;  %s117_s22 = sand.u32 1, %s598_s11  }
   0xc   : > { %p679_p7 = por %p52_p5, %p51_p4  ;;  %s402_s23 = sshll.u32 %s606_s13, 6 }
   0xd   : > { %s685_s21 = scalar_select %p36_p6, %s598_s11, %s38_s17  }
   0xe   : > { %s401_s24 = sshll.u32 %s117_s22, 2  ;;  %s692_s27 = scalar_lea.hbm %s794_s0, %s402_s23 }
   0xf   : > { %s121_s28 = scalar_lea.vmem [#allocation2], %s401_s24  ;;  %p696_p9 = pnand %p443_p8, %p670_p3 }
  0x10   : > { %s129_s29 = sshll.u32 %s121_s28, 4  ;;  %s118_s3 = scalar_lea.sflag [#allocation3], %s117_s22  ;;  %s700_s29 = int_to_ptr.vmem [resolvable:$true] %s129_s29 }
  0x11   : > { %s500_s4 = scalar_lea.hbm %s692_s27, 64  ;;  %p502_p13 = pneg %p696_p9 }
  0x12   : > { %p501_p12 = scmp.ne.s32.totalorder %s692_s27, %s500_s4  ;;  %s505_s7 = scalar_lea.hbm %s794_s0, 128 }
  0x13   : > { %p506_p2 = scmp.lt.u32.totalorder %s692_s27, %s794_s0  ;;  %p507_p3 = scmp.lt.u32.totalorder %s505_s7, %s500_s4 }
  0x14   : > { %p503_p0 = pnand %p502_p13, %p501_p12  ;;  %p509_p5 = scmp.lt.u32.totalorder %s500_s4, %s692_s27 }
  0x15   : > { %p508_p4 = por %p507_p3, %p506_p2 }
  0x16   : > { %p504_p1 = pneg %p503_p0 }
  0x17   : > { %p510_p6 = por %p509_p5, %p508_p4 }
  0x19   : > { %p511_p8 = pnand %p510_p6, %p504_p1 }
  0x1b   : > { %514 = shalt.err (!%p511_p8)
}
  0x1c   : > { %s515_s17 = scalar_lea.vmem %s700_s29, 64  ;;  %s612_s18 = smov [#allocation2]  }
  0x1d   : > { %p516_p12 = scmp.ne.s32.totalorder %s700_s29, %s515_s17  ;;  %s520_s19 = sshll.u32 %s612_s18, 4  ;;  %s521_s19 = int_to_ptr.vmem [resolvable:$false] %s520_s19 }
  0x1e   : > { %s522_s22 = scalar_lea.vmem %s521_s19, 128  ;;  %p523_p11 = scmp.lt.s32.totalorder %s700_s29, %s521_s19 }
  0x1f   : > { %p518_p0 = pnand %p516_p12, %p502_p13  ;;  %p524_p2 = scmp.lt.s32.totalorder %s522_s22, %s515_s17 }
  0x21   : > { %p519_p10 = pneg %p518_p0  ;;  %p525_p3 = por %p524_p2, %p523_p11 }
  0x23   : > { %p526_p4 = pnand %p525_p3, %p519_p10 }
  0x25   : > { %529 = shalt.err (!%p526_p4)
}
  0x26   : > { %442 = dma.hbm_to_vmem [thread:$0]  (!%p696_p9), %s692_s27, 64, %s700_s29, %s118_s3  }
  0x27   : > { %p800_p1 = scmp.lt.s32.totalorder %s610_s14, 3  ;;  %p801_p5 = scmp.ge.s32.totalorder %s610_s14, 1 }
  0x29   : > { %p135_p13 = pnand %p801_p5, %p800_p1 }
  0x2a   : > { %s140_s23 = sand.u32 (!%p135_p13), 1, %s594_s10  }
  0x2b   : > { %138 = sbr.rel (%p135_p13) target bundleno = 297 (0x129), region = 24  ;;  %s404_s24 = sshll.u32 (!%p135_p13), %s140_s23, 2 }
  0x2c   : > { %s141_s25 = scalar_lea.sflag (!%p135_p13), [#allocation3], %s140_s23  ;;  %s144_s26 = scalar_lea.vmem (!%p135_p13), [#allocation2], %s404_s24 }
  0x32   : > { %581 = dma.done.wait (%p679_p7), %s141_s25, 64  }
  0x33   : > { %583 = vsyncadd (%p679_p7), %s141_s25, 4294967232  ;;  %p160_p10 = scmp.eq.s32.totalorder %s602_s12, 0 }
  0x34   : > { %vm166_vm0 = vcmask (%p160_p10), 3072   ;;  %vm168_vm1 = vcmask (%p160_p10), 27648   ;;  %v613_v0 = vmov (%p160_p10), 0.0  }
  0x35   : > { %165 = sbr.rel (!%p160_p10) target bundleno = 60 (0x3c), region = 32  ;;  %167 = vst.msk [vmem:[%s795_s1] sm:$0xf] (%p160_p10), %vm166_vm0, %v613_v0 }
  0x36   : > { %169 = vst.msk [vmem:[#allocation5] sm:$0xf] (%p160_p10), %vm168_vm1, %v613_v0 }
  0x3c PF: > { %v170_v1 = vld [vmem:[%s144_s26] sm:$0xf]  ;;  %v614_v2 = vmov 0.0|0.0   ;;  %v615_v3 = vmov 0.0   ;;  %v616_v5 = vmov 1.0|1.0  }
  0x3d   : > { %431 = vmatprep.subr.bf16.mxu0 %v614_v2  ;;  %426 = vmatprep.subr.mxu1 %v615_v3  ;;  %v171_v4 = vpack.c.bf16 %v170_v1, %v170_v1  ;;  %vm174_vm2 = vcmask 130048   ;;  %vm617_vm3 = vmmov 0   ;;  %v173_v7 = vld [vmem:[%s795_s1] sm:$0xf]  ;;  %vm249_vm4 = vcmask 3072   ;;  %s618_s29 = smov [#allocation5]  }
  0x3e   : > { %432 = vmatpush3.bf16.msra.mxu0 %v616_v5  ;;  %423 = vmatprep.mubr.msk.f32.mxu0 %vm617_vm3, %v615_v3  ;;  %v251_v10 = vld [vmem:[#allocation5] sm:$0xf]  ;;  %s335_s30 = sshll.u32 %s618_s29, 4  ;;  %vm323_vm5 = vcmask 27648   ;;  %p750_p7 = scmp.eq.s32.totalorder %s398_s15, 1  ;;  %s336_s30 = int_to_ptr.vmem [resolvable:$true] %s335_s30 }
  0x3f   : > { %v172_v6 = vunpack.c.l.bf16 %v171_v4  ;;  %428 = vmatprep.mubr.msk.f32.mxu1 %vm617_vm3, %v615_v3  ;;  %s530_s6 = scalar_lea.vmem %s336_s30, 64  ;;  %p537_p8 = scmp.lt.s32.totalorder %s336_s30, %s336_s30 }
  0x40   : > { %p531_p9 = scmp.ne.s32.totalorder %s336_s30, %s530_s6  ;;  %p538_p12 = scmp.lt.s32.totalorder %s530_s6, %s530_s6 }
  0x41   : > { %427 = vmatpush3.xpose.msk.msra.mxu1 %vm174_vm2, %v172_v6  ;;  %424 = vmatmul.mubr.msk.f32.vlgmr.msra.gmra.mrb[0].mxu0 %vm174_vm2, %v172_v6 }
  0x42   : > { %p532_p11 = pnand %p531_p9, %p750_p7  ;;  %p539_p0 = por %p538_p12, %p537_p8 }
  0x44   : > { %429 = vmatmul.mubr.msk.f32.vlgmr.msra.gmra.mrb[0].mxu1 %vm174_vm2, %v172_v6  ;;  %p533_p6 = pneg %p532_p11 }
  0x46   : > { %p540_p2 = pnand %p539_p0, %p533_p6 }
 0x114   : > { %v244_v8 = vpop.f32.mrb[0].mxu0 }
 0x115   : > { %v248_v9 = vadd.f32 %v244_v8, %v173_v7  ;;  %v425_v11 = vpop.f32.mrb[1].mxu0 }
 0x117   : > { %250 = vst.msk [vmem:[%s795_s1] sm:$0xf] %vm249_vm4, %v248_v9  ;;  %v318_v12 = vpop.f32.mrb[0].mxu1 }
 0x118   : > { %v322_v13 = vadd.f32 %v318_v12, %v251_v10  ;;  %v430_v14 = vpop.f32.mrb[1].mxu1 }
 0x11a   : > { %324 = vst.msk [vmem:[#allocation5] sm:$0xf] %vm323_vm5, %v322_v13 }
 0x11b   : > { %543 = shalt.err (!%p540_p2)
}
 0x11c   : > { %s544_s8 = scalar_lea.hbm %s796_s2, 64 }
 0x11d   : > { %p545_p3 = scmp.ne.s32.totalorder %s796_s2, %s544_s8  ;;  %p550_p5 = scmp.lt.u32.totalorder %s544_s8, %s796_s2 }
 0x11f   : > { %p546_p4 = pnand %p545_p3, %p750_p7 }
 0x121   : > { %p547_p1 = pneg %p546_p4 }
 0x123   : > { %p552_p13 = pnand %p550_p5, %p547_p1 }
 0x125   : > { %555 = shalt.err (!%p552_p13)
}
 0x126   : > { %436 = dma.vmem_to_hbm [thread:$0]  (%p750_p7), %s336_s30, 64, %s796_s2, [#allocation4]  }
 0x127   : > { %585 = dma.done.wait (%p750_p7), [#allocation4], 64  }
 0x128   : > { %587 = vsyncadd (%p750_p7), [#allocation4], 4294967232 }
 0x129 PF: > { %s17_s14 = sadd.s32 1, %s610_s14   ;;  %s803_s9 = smov %s594_s10 }
 0x12a   : > { %p14_p10 = scmp.ge.s32.totalorder %s17_s14, 4   ;;  %s804_s10 = smov %s598_s11 }
 0x12b   : > { %s805_s11 = smov %s685_s21  ;;  %s806_s12 = smov %s606_s13 }
 0x12c   : > { %s807_s13 = smov %s809_s16  ;;  %16 = sbr.rel (!%p14_p10) target bundleno = 5 (0x5), region = 73 }
 0x133   :  { %351 = vsyncpa [#allocation3], 1 }
 0x134   :  { %353 = vsyncpa [#allocation3 + $0x1], 1 }
 0x135   :  { %354 = vsyncpa [#allocation4], 1 }
 0x136   :  { %356 = vsyncpa [#allocation4 + $0x1], 1 }

</bundles_post_ra>
